<compile_context>
chip_gen: v7x
topology: tpu7x:2x2x1
jax: 0.10.0
libtpu: 0.0.40
codegen_flags: <defaults>
</compile_context>

<pallas_src>
import functools

import jax
import jax.numpy as jnp
from jax.experimental import pallas as pl
from jax.experimental.pallas import tpu as pltpu


def _round_up(x, m):
    return (x + m - 1) // m * m


def _cdiv(a, b):
    return -(-a // b)


def _vmem_capacity_bytes():
    try:
        info = pltpu.get_tpu_info()
        cap = getattr(info, "vmem_capacity_bytes", None)
        if cap:
            return int(cap)
    except Exception:
        pass
    return 64 * 2 ** 20  # conservative default (v7x per-TensorCore VMEM)


def _conv_block_kernel(x_ref, w_ref, p_ref, o_ref, *, l_tile):
    # x_ref : (C_in_pad, Lp_pad)         replicate+zero padded activations (one batch)
    # w_ref : (K, C_out_pad, C_in_pad)   conv weight, tap-major
    # p_ref : (C_out_pad, 3)             [conv bias | BN scale | BN shift]
    # o_ref : (C_out_pad, L_out_pad)     lane-dense NCL output (one batch)
    k_taps = w_ref.shape[0]
    l_out_pad = o_ref.shape[-1]

    bias = p_ref[:, 0:1]     # hoisted out of the tile loop
    scale = p_ref[:, 1:2]
    shift = p_ref[:, 2:3]

    # Static unroll over L tiles: all slices/stores use static offsets.
    for t in range(l_out_pad // l_tile):
        base = t * l_tile
        halo = x_ref[:, base:base + l_tile + k_taps - 1]   # (C_in_pad, l_tile+K-1)
        # fused im2col: K shifted taps accumulated on the MXU in f32
        acc = jnp.dot(w_ref[0], halo[:, 0:l_tile],
                      preferred_element_type=jnp.float32)
        for k in range(1, k_taps):
            acc += jnp.dot(w_ref[k], halo[:, k:k + l_tile],
                           preferred_element_type=jnp.float32)
        acc = jnp.maximum(acc + bias, 0.0)                  # conv bias + ReLU
        # Dropout(p=0.4) in eval mode is the identity.
        o_ref[:, base:base + l_tile] = (acc * scale + shift).astype(o_ref.dtype)


def conv_block_forward(x, weight, bias, gamma, beta, running_mean, running_var,
                       *, padding=1, eps=1e-5, compute_dtype=jnp.bfloat16,
                       out_dtype=None, l_tile=None):
    """x: (N, C_in, L).  Returns (N, C_out, L_out) in out_dtype (default x.dtype)."""
    N, C_in, L = x.shape
    C_out, _, K = weight.shape
    if out_dtype is None:
        out_dtype = x.dtype

    # ---- replicate padding + BN folding (tiny, stays in the wrapper) -------
    x = x.astype(jnp.float32)
    x_pad = jnp.pad(x, ((0, 0), (0, 0), (padding, padding)), mode="edge")
    Lp = L + 2 * padding
    L_out = Lp - K + 1                              # stride=1, dilation=1

    x_item = jnp.dtype(compute_dtype).itemsize
    out_item = jnp.dtype(out_dtype).itemsize
    packing = 8 * max(1, 4 // x_item)               # sublane packing: 8 f32 / 16 bf16
    C_in_pad = _round_up(C_in, packing)
    C_out_pad = _round_up(C_out, packing)

    # inner compute tile along L (multiple of 128 lanes; bounds live vreg values)
    if l_tile is None:
        l_tile = 512
    l_tile = max(128, min(_round_up(l_tile, 128), _round_up(L_out, 128)))
    num_l = _cdiv(L_out, l_tile)
    L_out_pad = num_l * l_tile
    Lp_pad = L_out_pad + K - 1
    # TODO(synk): very long sequences should switch to an L-tiled halo pipeline
    # instead of one full-length (C_in_pad, Lp_pad) block per batch element.

    # ---- pad operands to TPU-friendly shapes --------------------------------
    x_pad = jnp.pad(x_pad, ((0, 0), (0, C_in_pad - C_in), (0, Lp_pad - Lp)))
    x_pad = x_pad.astype(compute_dtype)

    w = jnp.transpose(weight, (2, 0, 1))            # (K, C_out, C_in)
    w = jnp.pad(w, ((0, 0), (0, C_out_pad - C_out), (0, C_in_pad - C_in)))
    w = w.astype(compute_dtype)

    scale = gamma * jax.lax.rsqrt(running_var + eps)
    shift = beta - running_mean * scale
    params = jnp.stack([bias, scale, shift], axis=1).astype(jnp.float32)
    params = jnp.pad(params, ((0, C_out_pad - C_out), (0, 0)))   # (C_out_pad, 3)

    # ---- generation-aware VMEM budget ---------------------------------------
    vmem_cap = _vmem_capacity_bytes()
    vmem_needed = (2 * C_in_pad * _round_up(Lp_pad, 128) * x_item       # x (dbl buf)
                   + 2 * C_out_pad * L_out_pad * out_item               # out (dbl buf)
                   + 2 * K * C_out_pad * _round_up(C_in_pad, 128) * x_item
                   + 2 * _round_up(C_out_pad, 8) * 128 * 4)             # params
    vmem_limit = int(min(0.55 * vmem_cap, max(16 * 2 ** 20, 2 * vmem_needed)))
    vmem_limit = max(vmem_limit, vmem_needed + (1 << 20))

    kernel = functools.partial(_conv_block_kernel, l_tile=l_tile)

    out = pl.pallas_call(
        kernel,
        out_shape=jax.ShapeDtypeStruct((N, C_out_pad, L_out_pad), out_dtype),
        grid_spec=pltpu.PrefetchScalarGridSpec(
            num_scalar_prefetch=0,
            grid=(N,),                                     # batch-parallel grid
            in_specs=[
                pl.BlockSpec((pl.Squeezed(), C_in_pad, Lp_pad),
                             lambda n: (n, 0, 0)),         # activations (one batch)
                pl.BlockSpec((K, C_out_pad, C_in_pad),
                             lambda n: (0, 0, 0)),         # weights (resident)
                pl.BlockSpec((C_out_pad, 3),
                             lambda n: (0, 0)),            # bias/scale/shift
            ],
            out_specs=pl.BlockSpec((pl.Squeezed(), C_out_pad, L_out_pad),
                                   lambda n: (n, 0, 0)),
        ),
        compiler_params=pltpu.CompilerParams(
            dimension_semantics=("parallel",),
            vmem_limit_bytes=vmem_limit),
    )(x_pad, w, params)

    return out[:, :C_out, :L_out]


def _reference(x, weight, bias, gamma, beta, running_mean, running_var,
               *, padding=1, eps=1e-5, cast_dtype=None):
    x_pad = jnp.pad(x, ((0, 0), (0, 0), (padding, padding)), mode="edge")
    if cast_dtype is not None:
        x_pad = x_pad.astype(cast_dtype)
        weight = weight.astype(cast_dtype)
        bias = bias.astype(cast_dtype)
    y = jax.lax.conv_general_dilated(
        x_pad, weight, window_strides=(1,), padding="VALID",
        dimension_numbers=("NCH", "OIH", "NCH"),
        preferred_element_type=jnp.float32)
    y = y + bias.astype(jnp.float32)[None, :, None]
    y = jnp.maximum(y, 0.0)
    y = (y - running_mean[None, :, None]) / jnp.sqrt(
        running_var[None, :, None] + eps)
    y = y * gamma[None, :, None] + beta[None, :, None]
    return y


def _make_inputs(key, N, C_in, C_out, L, K):
    k1, k2, k3, k4, k5, k6 = jax.random.split(key, 6)
    x = jax.random.normal(k1, (N, C_in, L), dtype=jnp.float32)
    weight = jax.random.normal(k2, (C_out, C_in, K), dtype=jnp.float32) * 0.3
    bias = jax.random.normal(k3, (C_out,), dtype=jnp.float32) * 0.1
    gamma = jnp.abs(jax.random.normal(k4, (C_out,), dtype=jnp.float32)) + 0.5
    beta = jax.random.normal(k5, (C_out,), dtype=jnp.float32) * 0.1
    mean = jax.random.normal(k6, (C_out,), dtype=jnp.float32) * 0.1
    var = jnp.ones((C_out,), dtype=jnp.float32) + 0.1
    return x, weight, bias, gamma, beta, mean, var


if __name__ == "__main__":
    # shape 1: module's nominal small config (N=2, C_in=4, C_out=8, L=16, K=3)
    args1 = _make_inputs(jax.random.PRNGKey(0), 2, 4, 8, 16, 3)

    out_f32 = jax.block_until_ready(
        conv_block_forward(*args1, padding=1, compute_dtype=jnp.float32))
    ref_f32 = _reference(*args1, padding=1)
    assert out_f32.shape == (2, 8, 16), out_f32.shape
    assert jnp.allclose(out_f32, ref_f32, atol=5e-4, rtol=5e-4), \
        float(jnp.max(jnp.abs(out_f32 - ref_f32)))

    out_bf16 = jax.block_until_ready(
        conv_block_forward(*args1, padding=1, compute_dtype=jnp.bfloat16))
    ref_bf16 = _reference(*args1, padding=1, cast_dtype=jnp.bfloat16)
    assert jnp.allclose(out_bf16, ref_bf16, atol=5e-3, rtol=5e-3), \
        float(jnp.max(jnp.abs(out_bf16 - ref_bf16)))

    # bf16 output path (halved store traffic)
    out_bf16o = jax.block_until_ready(
        conv_block_forward(*args1, padding=1, compute_dtype=jnp.bfloat16,
                           out_dtype=jnp.bfloat16))
    assert out_bf16o.dtype == jnp.bfloat16
    assert jnp.allclose(out_bf16o.astype(jnp.float32), ref_bf16,
                        atol=5e-2, rtol=5e-2), \
        float(jnp.max(jnp.abs(out_bf16o.astype(jnp.float32) - ref_bf16)))

    # shape 2: exercises channel / contraction padding paths (K=5, padding=2)
    args2 = _make_inputs(jax.random.PRNGKey(1), 3, 5, 6, 20, 5)
    out2 = jax.block_until_ready(
        conv_block_forward(*args2, padding=2, compute_dtype=jnp.float32))
    ref2 = _reference(*args2, padding=2)
    assert out2.shape == (3, 6, 20), out2.shape
    assert jnp.allclose(out2, ref2, atol=5e-4, rtol=5e-4), \
        float(jnp.max(jnp.abs(out2 - ref2)))

    # shape 3: multi-L-tile path (forced l_tile=128 -> 3 inner tiles + tail pad)
    args3 = _make_inputs(jax.random.PRNGKey(2), 2, 4, 8, 300, 3)
    out3 = jax.block_until_ready(
        conv_block_forward(*args3, padding=1, compute_dtype=jnp.float32,
                           l_tile=128))
    ref3 = _reference(*args3, padding=1)
    assert out3.shape == (2, 8, 300), out3.shape
    assert jnp.allclose(out3, ref3, atol=5e-4, rtol=5e-4), \
        float(jnp.max(jnp.abs(out3 - ref3)))

    print("KERNEL_OK")
</pallas_src>

<mosaic_0001>
module attributes {stable_mosaic.version = 11 : i64} {
  func.func @_conv_block_kernel(%arg0: i32, %arg1: memref<1x8x130xf32, #tpu.memory_space<vmem>>, %arg2: memref<3x8x8xf32, #tpu.memory_space<vmem>>, %arg3: memref<8x3xf32, #tpu.memory_space<vmem>>, %arg4: memref<1x8x128xf32, #tpu.memory_space<vmem>>) attributes {dimension_semantics = [#tpu.dimension_semantics<parallel>], iteration_bounds = array<i64: 2>, scalar_prefetch = 0 : i64, scratch_operands = 0 : i64, tpu.core_type = #tpu.core_type<tc>, window_params = [{transform_indices = @transform_0, window_bounds = array<i64: 1, 8, 130>}, {pipeline_mode = #tpu.pipeline_mode<synchronous>, transform_indices = @transform_1, window_bounds = array<i64: 3, 8, 8>}, {pipeline_mode = #tpu.pipeline_mode<synchronous>, transform_indices = @transform_2, window_bounds = array<i64: 8, 3>}, {transform_indices = @transform_3, window_bounds = array<i64: 1, 8, 128>}]} {
    %c0 = arith.constant 0 : index
    %c0_0 = arith.constant 0 : index
    %0 = vector.load %arg3[%c0, %c0_0] : memref<8x3xf32, #tpu.memory_space<vmem>>, vector<8x1xf32>
    %c0_1 = arith.constant 0 : index
    %c1 = arith.constant 1 : index
    %1 = vector.load %arg3[%c0_1, %c1] : memref<8x3xf32, #tpu.memory_space<vmem>>, vector<8x1xf32>
    %c0_2 = arith.constant 0 : index
    %c2 = arith.constant 2 : index
    %2 = vector.load %arg3[%c0_2, %c2] : memref<8x3xf32, #tpu.memory_space<vmem>>, vector<8x1xf32>
    %c0_3 = arith.constant 0 : index
    %c0_4 = arith.constant 0 : index
    %c0_5 = arith.constant 0 : index
    %3 = vector.load %arg1[%c0_3, %c0_4, %c0_5] : memref<1x8x130xf32, #tpu.memory_space<vmem>>, vector<1x8x130xf32>
    %4 = vector.shape_cast %3 : vector<1x8x130xf32> to vector<8x130xf32>
    %c0_6 = arith.constant 0 : index
    %c0_7 = arith.constant 0 : index
    %c0_8 = arith.constant 0 : index
    %5 = vector.load %arg2[%c0_6, %c0_7, %c0_8] : memref<3x8x8xf32, #tpu.memory_space<vmem>>, vector<1x8x8xf32>
    %6 = vector.shape_cast %5 : vector<1x8x8xf32> to vector<8x8xf32>
    %7 = vector.extract_strided_slice %4 {offsets = [0, 0], sizes = [8, 128], strides = [1, 1]} : vector<8x130xf32> to vector<8x128xf32>
    %cst = arith.constant dense<0.000000e+00> : vector<8x128xf32>
    %8 = tpu.matmul %6, %7, %cst {dimension_numbers = #tpu.dot_dimension_numbers<[1], [0], [0], [1], [0, 0, 1, 1], [], []>} : vector<8x8xf32>, vector<8x128xf32>, vector<8x128xf32> -> vector<8x128xf32>
    %c1_9 = arith.constant 1 : index
    %c0_10 = arith.constant 0 : index
    %c0_11 = arith.constant 0 : index
    %9 = vector.load %arg2[%c1_9, %c0_10, %c0_11] : memref<3x8x8xf32, #tpu.memory_space<vmem>>, vector<1x8x8xf32>
    %10 = vector.shape_cast %9 : vector<1x8x8xf32> to vector<8x8xf32>
    %11 = vector.extract_strided_slice %4 {offsets = [0, 1], sizes = [8, 128], strides = [1, 1]} : vector<8x130xf32> to vector<8x128xf32>
    %cst_12 = arith.constant dense<0.000000e+00> : vector<8x128xf32>
    %12 = tpu.matmul %10, %11, %cst_12 {dimension_numbers = #tpu.dot_dimension_numbers<[1], [0], [0], [1], [0, 0, 1, 1], [], []>} : vector<8x8xf32>, vector<8x128xf32>, vector<8x128xf32> -> vector<8x128xf32>
    %13 = arith.addf %8, %12 : vector<8x128xf32>
    %c2_13 = arith.constant 2 : index
    %c0_14 = arith.constant 0 : index
    %c0_15 = arith.constant 0 : index
    %14 = vector.load %arg2[%c2_13, %c0_14, %c0_15] : memref<3x8x8xf32, #tpu.memory_space<vmem>>, vector<1x8x8xf32>
    %15 = vector.shape_cast %14 : vector<1x8x8xf32> to vector<8x8xf32>
    %16 = vector.extract_strided_slice %4 {offsets = [0, 2], sizes = [8, 128], strides = [1, 1]} : vector<8x130xf32> to vector<8x128xf32>
    %cst_16 = arith.constant dense<0.000000e+00> : vector<8x128xf32>
    %17 = tpu.matmul %15, %16, %cst_16 {dimension_numbers = #tpu.dot_dimension_numbers<[1], [0], [0], [1], [0, 0, 1, 1], [], []>} : vector<8x8xf32>, vector<8x128xf32>, vector<8x128xf32> -> vector<8x128xf32>
    %18 = arith.addf %13, %17 : vector<8x128xf32>
    %19 = vector.broadcast %0 : vector<8x1xf32> to vector<8x128xf32>
    %20 = arith.addf %18, %19 : vector<8x128xf32>
    %cst_17 = arith.constant 0.000000e+00 : f32
    %21 = vector.broadcast %cst_17 : f32 to vector<8x128xf32>
    %22 = arith.maximumf %20, %21 : vector<8x128xf32>
    %23 = vector.broadcast %1 : vector<8x1xf32> to vector<8x128xf32>
    %24 = arith.mulf %22, %23 : vector<8x128xf32>
    %25 = vector.broadcast %2 : vector<8x1xf32> to vector<8x128xf32>
    %26 = arith.addf %24, %25 : vector<8x128xf32>
    %c0_18 = arith.constant 0 : index
    %c0_19 = arith.constant 0 : index
    %c0_20 = arith.constant 0 : index
    %27 = vector.load %arg4[%c0_18, %c0_19, %c0_20] : memref<1x8x128xf32, #tpu.memory_space<vmem>>, vector<1x8x128xf32>
    %28 = vector.shape_cast %27 : vector<1x8x128xf32> to vector<8x128xf32>
    %29 = vector.shape_cast %26 : vector<8x128xf32> to vector<1x8x128xf32>
    tpu.vector_store %arg4[%c0_18, %c0_19, %c0_20], %29 {strides = array<i32>} : memref<1x8x128xf32, #tpu.memory_space<vmem>>, vector<1x8x128xf32>,
    return
  }
  func.func @transform_0(%arg0: i32) -> (i32, i32, i32) {
    %c0_i32 = arith.constant 0 : i32
    %c0_i32_0 = arith.constant 0 : i32
    %c0_i32_1 = arith.constant 0 : i32
    return %arg0, %c0_i32, %c0_i32_0 : i32, i32, i32
  }
  func.func @transform_1(%arg0: i32) -> (i32, i32, i32) {
    %c0_i32 = arith.constant 0 : i32
    %c0_i32_0 = arith.constant 0 : i32
    %c0_i32_1 = arith.constant 0 : i32
    %c0_i32_2 = arith.constant 0 : i32
    return %c0_i32, %c0_i32_0, %c0_i32_1 : i32, i32, i32
  }
  func.func @transform_2(%arg0: i32) -> (i32, i32) {
    %c0_i32 = arith.constant 0 : i32
    %c0_i32_0 = arith.constant 0 : i32
    %c0_i32_1 = arith.constant 0 : i32
    return %c0_i32, %c0_i32_0 : i32, i32
  }
  func.func @transform_3(%arg0: i32) -> (i32, i32, i32) {
    %c0_i32 = arith.constant 0 : i32
    %c0_i32_0 = arith.constant 0 : i32
    %c0_i32_1 = arith.constant 0 : i32
    return %arg0, %c0_i32, %c0_i32_0 : i32, i32, i32
  }
}

</mosaic_0001>

<bundles_post_ra>
// kernel: tpu_custom_call.1
= control target key start
LH: loop header
LB: loop body
LE: loop exit
PB: predicated region body
PF: predicated region fallthrough
CT: control target
= control target key end

     0   :  { %8 = vsyncpa [#allocation3], 0  ;;  %s1037_s0 = inlined_call_operand.hbm [shape: f32[2,8,130], index: 0, kind: input, shape index: {}]   ;;  %s1038_s1 = inlined_call_operand.hbm [shape: f32[3,8,8], index: 1, kind: input, shape index: {}]   ;;  %s1039_s2 = inlined_call_operand.vmem [shape: f32[8,3], index: 2, kind: input, shape index: {}]   ;;  %s1040_s3 = inlined_call_operand.hbm [shape: f32[2,8,128], index: 3, kind: output, shape index: {}]  }
   0x1   :  { %10 = vsyncpa [#allocation3 + $0x1], 0 }
   0x2   :  { %11 = vsyncpa [#allocation6], 0 }
   0x3   :  { %12 = vsyncpa [#allocation4], 0 }
   0x4   :  { %14 = vsyncpa [#allocation4 + $0x1], 0  ;;  %s831_s12 = smov 0   ;;  %s833_s13 = smov 0  }
   0x5   :  { %s835_s14 = smov 0   ;;  %s837_s15 = smov 0  }
   0x6 LB: > { %s852_s16 = sadd.s32 4294967295, %s797_s15   ;;  %s559_s17 = sadd.s32 4294967294, %s797_s15   ;;  %s797_s15 = sphi %s837_s15, %s1060_s15   ;;  %s793_s14 = sphi %s835_s14, %s1059_s14   ;;  %s789_s13 = sphi %s833_s13, %s1058_s13   ;;  %s785_s12 = sphi %s831_s12, %s1057_s12  }
   0x7   : > { %p40_p0 = scmp.ne.s32.totalorder %s789_s13, %s785_s12  ;;  %p1041_p1 = scmp.eq.s32.totalorder %s852_s16, 0 }
   0x8   : > { %p112_p3 = scmp.eq.s32.totalorder %s559_s17, 1  ;;  %p560_p5 = scmp.ge.s32.totalorder %s797_s15, 1 }
   0x9   : > { %p861_p4 = por %p1041_p1, %p40_p0  ;;  %p119_p7 = scmp.lt.s32.totalorder %s797_s15, 3 }
   0xa   : > { %p866_p6 = por %p112_p3, %p40_p0  ;;  %s799_s21 = smov [#allocation5]  }
   0xb   : > { %s1044_s18 = scalar_select %p861_p4, 1, 0 }
   0xc   : > { %s1045_s19 = scalar_select %p866_p6, 1, 0 }
   0xd   : > { %p871_p8 = pnand %p560_p5, %p119_p7  ;;  %s131_s22 = sshll.u32 %s799_s21, 4  ;;  %s875_s22 = int_to_ptr.vmem [resolvable:$true] %s131_s22 }
   0xe   : > { %s887_s24 = sadd.s32 1, %s797_s15   ;;  %s27_s25 = sadd.s32 1, %s793_s14 }
   0xf   : > { %s1046_s20 = scalar_select %p871_p8, 1, 0 }
  0x10   : > { %p607_p9 = pneg %p871_p8  ;;  %s24_s26 = ssub.s32 %s797_s15, %s887_s24 }
  0x11   : > { %s669_s29 = scalar_lea.hbm %s1038_s1, 384 }
  0x12   : > { %p882_p11 = pnand %p607_p9, %p1041_p1  ;;  %p670_p12 = scmp.ne.s32.totalorder %s1038_s1, %s669_s29 }
  0x13   : > { %p676_p5 = scmp.lt.u32.totalorder %s669_s29, %s1038_s1 }
  0x14   : > { %p671_p13 = pneg %p882_p11 }
  0x16   : > { %p672_p0 = pnand %p671_p13, %p670_p12 }
  0x18   : > { %p673_p3 = pneg %p672_p0 }
  0x1a   : > { %p678_p7 = pnand %p676_p5, %p673_p3 }
  0x1c   : > { %681 = shalt.err (!%p678_p7)
}
  0x1d   : > { %s682_s7 = scalar_lea.vmem %s875_s22, 384  ;;  %p690_p2 = scmp.lt.s32.totalorder %s875_s22, %s875_s22 }
  0x1e   : > { %p683_p9 = scmp.ne.s32.totalorder %s875_s22, %s682_s7  ;;  %p691_p6 = scmp.lt.s32.totalorder %s682_s7, %s682_s7 }
  0x20   : > { %p685_p10 = pnand %p683_p9, %p671_p13  ;;  %p692_p4 = por %p691_p6, %p690_p2 }
  0x22   : > { %p686_p1 = pneg %p685_p10 }
  0x24   : > { %p693_p8 = pnand %p692_p4, %p686_p1 }
  0x26   : > { %696 = shalt.err (!%p693_p8)
}
  0x27   : > { %s800_s8 = smov 128   ;;  %s801_s9 = smov 8  }
  0x28   : > { %610 = dma.hbm_to_vmem [thread:$0]  (!%p882_p11), %s1038_s1, 384, %s875_s22, [#allocation6], %s800_s8, %s800_s8, %s801_s9  }
  0x29   : > { %p25_p2 = scmp.eq.s32.totalorder %s24_s26, 0  ;;  %p34_p1 = scmp.ne.s32.totalorder %s793_s14, %s789_s13 }
  0x2a   : > { %p35_p4 = scmp.eq.s32.totalorder %s797_s15, 0  ;;  %p620_p6 = scmp.lt.s32.totalorder %s797_s15, 2 }
  0x2b   : > { %s918_s17 = scalar_select %p25_p2, %s793_s14, %s27_s25  }
  0x2c   : > { %p36_p8 = por %p35_p4, %p34_p1  ;;  %p1048_p10 = scmp.eq.s32.totalorder %s852_s16, 1 }
  0x2d   : > { %s148_s27 = sand.u32 1, %s793_s14   ;;  %s577_s28 = sshll.u32 %s797_s15, 8 }
  0x2e   : > { %p922_p12 = por %p1048_p10, %p34_p1  ;;  %s563_s29 = sshll.u32 %s148_s27, 4 }
  0x2f   : > { %s931_s4 = scalar_lea.hbm %s1037_s0, %s577_s28  ;;  %s152_s22 = scalar_lea.vmem [#allocation2], %s563_s29 }
  0x30   : > { %s160_s25 = sshll.u32 %s152_s22, 4  ;;  %p933_p11 = pnand %p620_p6, %p36_p8  ;;  %s937_s25 = int_to_ptr.vmem [resolvable:$true] %s160_s25 }
  0x31   : > { %s149_s5 = scalar_lea.sflag [#allocation3], %s148_s27  ;;  %s697_s6 = scalar_lea.hbm %s931_s4, 256 }
  0x32   : > { %p698_p13 = scmp.ne.s32.totalorder %s931_s4, %s697_s6  ;;  %p699_p0 = pneg %p933_p11 }
  0x33   : > { %s702_s9 = scalar_lea.hbm %s1037_s0, 512  ;;  %p703_p7 = scmp.lt.u32.totalorder %s931_s4, %s1037_s0 }
  0x34   : > { %p700_p3 = pnand %p699_p0, %p698_p13  ;;  %p704_p9 = scmp.lt.u32.totalorder %s702_s9, %s697_s6 }
  0x35   : > { %p706_p1 = scmp.lt.u32.totalorder %s697_s6, %s931_s4 }
  0x36   : > { %p701_p5 = pneg %p700_p3  ;;  %p705_p2 = por %p704_p9, %p703_p7 }
  0x38   : > { %p707_p4 = por %p706_p1, %p705_p2 }
  0x3a   : > { %p708_p6 = pnand %p707_p4, %p701_p5 }
  0x3c   : > { %711 = shalt.err (!%p708_p6)
}
  0x3d   : > { %s712_s27 = scalar_lea.vmem %s937_s25, 256  ;;  %s802_s28 = smov [#allocation2]  }
  0x3e   : > { %p713_p8 = scmp.ne.s32.totalorder %s937_s25, %s712_s27  ;;  %s717_s29 = sshll.u32 %s802_s28, 4  ;;  %s718_s29 = int_to_ptr.vmem [resolvable:$false] %s717_s29 }
  0x3f   : > { %s719_s23 = scalar_lea.vmem %s718_s29, 512  ;;  %p720_p3 = scmp.lt.s32.totalorder %s937_s25, %s718_s29 }
  0x40   : > { %p715_p10 = pnand %p713_p8, %p699_p0  ;;  %p721_p7 = scmp.lt.s32.totalorder %s719_s23, %s712_s27 }
  0x42   : > { %p716_p13 = pneg %p715_p10  ;;  %p722_p9 = por %p721_p7, %p720_p3 }
  0x44   : > { %p723_p2 = pnand %p722_p9, %p716_p13 }
  0x46   : > { %726 = shalt.err (!%p723_p2)
}
  0x47   : > { %614 = dma.hbm_to_vmem [thread:$0]  (!%p933_p11), %s931_s4, 256, %s937_s25, %s149_s5  }
  0x48   : > { %p1051_p5 = scmp.ne.s32.totalorder %s1046_s20, 0 }
  0x49   : > { %s967_s30 = sand.u32 (!%p1051_p5), 1, %s789_s13   ;;  %p1052_p0 = scmp.ne.s32.totalorder (!%p1051_p5), %s1044_s18, 0 }
  0x4a   : > { %169 = sbr.rel (%p1051_p5) target bundleno = 450 (0x1c2), region = 32  ;;  %s567_s22 = sshll.u32 (!%p1051_p5), %s967_s30, 4 }
  0x4b   : > { %s172_s6 = scalar_lea.sflag (!%p1051_p5), [#allocation3], %s967_s30  ;;  %s175_s7 = scalar_lea.vmem (!%p1051_p5), [#allocation2], %s567_s22 }
  0x51   : > { %772 = dma.done.wait (%p1052_p0), %s172_s6, 256  }
  0x52   : > { %774 = vsyncadd (%p1052_p0), %s172_s6, 4294967040  ;;  %p1053_p1 = scmp.eq.s32.totalorder %s852_s16, 0 }
  0x54   : > { %776 = dma.done.wait (%p1053_p1), [#allocation6], 384   ;;  %p1054_p11 = pmov %p1053_p1 }
  0x55   : > { %v803_v0 = vmov 0.0   ;;  %vm804_vm0 = vmmov 0   ;;  %v805_v1 = vmov 0   ;;  %v806_v2 = vmov 1   ;;  %v203_v3 = vld [vmem:[%s175_s7] sm:$0xff]  ;;  %s807_s18 = smov 126  }
  0x56   : > { %778 = vsyncadd (%p1054_p11), [#allocation6], 4294966912  ;;  %584 = vmatprep.subr.mxu0 %v803_v0  ;;  %589 = vmatprep.subr.mxu1 %v803_v0  ;;  %vm217_vm1 = vcmask 64512   ;;  %s808_s20 = smov 127   ;;  %v205_v4 = vld [vmem:[#allocation5] sm:$0xff]  ;;  %v204_v5 = vld [vmem:[%s175_s7 + $0x8] sm:$0xff] }
  0x57   : > { %586 = vmatprep.mubr.msk.f32.mxu0 %vm804_vm0, %v803_v0  ;;  %591 = vmatprep.mubr.msk.f32.mxu1 %vm804_vm0, %v803_v0  ;;  %v202_v6 = vld [vmem:[%s1039_s2] sm:$0xff]  ;;  %v809_v7 = vmov 2   ;;  %vm214_vm2 = vcmask 1039360   ;;  %vm370_vm3 = vcmask 1031168   ;;  %v207_v12 = vld [vmem:[#allocation5 + $0x8] sm:$0xff]  ;;  %v365_v15 = vld [vmem:[#allocation5 + $0x10] sm:$0xff] }
  0x58   : > { %665 = vset.pattern.permute.xlu0 %v805_v1  ;;  %666 = vset.pattern.permute.xlu1 %v806_v2  ;;  %s569_s26 = sshll.u32 %s967_s30, 3  ;;  %s574_s5 = sshll.u32 %s852_s16, 7 }
  0x59   : > { %366 = vrot.lane.b32.xlu1 %v203_v3, %s807_s18  ;;  %210 = vrot.lane.b32.xlu0 %v203_v3, %s808_s20  ;;  %s201_s8 = scalar_lea.vmem [#allocation7], %s569_s26  ;;  %s993_s27 = scalar_lea.hbm %s1040_s3, %s574_s5 }
  0x5a   : > { %590 = vmatpush3.msra.mxu1 %v203_v3  ;;  %s479_s9 = sshll.u32 %s201_s8, 4  ;;  %s466_s28 = scalar_lea.sflag [#allocation4], %s967_s30  ;;  %s995_s9 = int_to_ptr.vmem [resolvable:$true] %s479_s9 }
  0x5b   : > { %592 = vmatmul.mubr.msk.f32.vlgmr.msra.gmra.mrb[0].mxu1 %vm217_vm1, %v205_v4  ;;  %s727_s29 = scalar_lea.vmem %s995_s9, 128  ;;  %s810_s16 = smov [#allocation7]  }
  0x5c   : > { %p728_p4 = scmp.ne.s32.totalorder %s995_s9, %s727_s29  ;;  %s731_s23 = sshll.u32 %s810_s16, 4  ;;  %s732_s23 = int_to_ptr.vmem [resolvable:$false] %s731_s23 }
  0x5d   : > { %368 = vrot.lane.b32.xlu1 %v204_v5, %s807_s18  ;;  %212 = vrot.lane.b32.xlu0 %v204_v5, %s808_s20  ;;  %s733_s22 = scalar_lea.vmem %s732_s23, 256  ;;  %p734_p10 = scmp.lt.s32.totalorder %s995_s9, %s732_s23 }
  0x5e   : > { %p729_p6 = pnand %p728_p4, %p922_p12  ;;  %p735_p13 = scmp.lt.s32.totalorder %s733_s22, %s727_s29 }
  0x60   : > { %p730_p8 = pneg %p729_p6  ;;  %p736_p3 = por %p735_p13, %p734_p10 }
  0x61   : > { %449 = vperm.xlu0 %665, %v202_v6   ;;  %455 = vperm.xlu1 %666, %v202_v6  }
  0x62   : > { %p737_p7 = pnand %p736_p3, %p730_p8 }
  0x65   : > { %667 = vset.pattern.permute.xlu1 %v809_v7  ;;  %668 = vset.pattern.permute.xlu0 %v809_v7 }
  0x66   : > { %460 = vperm.xlu1 %667, %v202_v6  }
  0xcb   : > { %v367_v8 = vpop.permute.xlu1 %366  ;;  %v211_v9 = vpop.permute.xlu0 %210 }
  0xcf   : > { %v369_v10 = vpop.permute.xlu1 %368  ;;  %v213_v11 = vpop.permute.xlu0 %212 }
  0xd0   : > { %v215_v13 = vsel %vm214_vm2, %v211_v9, %v213_v11  ;;  %v371_v14 = vsel %vm370_vm3, %v367_v8, %v369_v10 }
  0xd1   : > { %585 = vmatpush3.msra.mxu0 %v215_v13 }
  0xd2   : > { %587 = vmatmul.mubr.msk.f32.vlgmr.msra.gmra.mrb[0].mxu0 %vm217_vm1, %v207_v12  ;;  %594 = vmatprep.subr.mxu0 %v803_v0 }
  0xd3   : > { %595 = vmatpush3.msra.mxu0 %v371_v14  ;;  %596 = vmatprep.mubr.msk.f32.mxu0 %vm804_vm0, %v803_v0 }
  0xd6   : > { %597 = vmatmul.mubr.msk.f32.vlgmr.msra.gmra.mrb[2].mxu0 %vm217_vm1, %v365_v15 }
  0xe0   : > { %v450_v21 = vpop.permute.xlu0 %449  ;;  %v456_v23 = vpop.permute.xlu1 %455 }
  0xe5   : > { %v461_v28 = vpop.permute.xlu1 %460 }
 0x12e   : > { %v360_v16 = vpop.f32.mrb[0].mxu1 }
 0x12f   : > { %v593_v17 = vpop.f32.mrb[1].mxu1 }
 0x1a5   : > { %v287_v18 = vpop.f32.mrb[0].mxu0 }
 0x1a6   : > { %v588_v19 = vpop.f32.mrb[1].mxu0  ;;  %v361_v20 = vadd.f32 %v360_v16, %v287_v18 }
 0x1a9   : > { %v442_v22 = vpop.f32.mrb[2].mxu0 }
 0x1aa   : > { %v446_v24 = vadd.f32 %v442_v22, %v361_v20  ;;  %v598_v25 = vpop.f32.mrb[3].mxu0 }
 0x1ac   : > { %v452_v26 = vadd.f32 %v450_v21, %v446_v24 }
 0x1ae   : > { %v453_v27 = vmax.f32 %v452_v26, 0.0 }
 0x1b0   : > { %v458_v29 = vmul.f32 %v456_v23, %v453_v27 }
 0x1b2   : > { %v463_v30 = vadd.f32 %v461_v28, %v458_v29 }
 0x1b4   : > { %464 = vst [vmem:[%s201_s8] sm:$0xff] %v463_v30 }
 0x1b5   : > { %740 = shalt.err (!%p737_p7)
}
 0x1b6   : > { %s741_s30 = scalar_lea.hbm %s993_s27, 128  ;;  %s745_s18 = scalar_lea.hbm %s1040_s3, 256 }
 0x1b7   : > { %p742_p9 = scmp.ne.s32.totalorder %s993_s27, %s741_s30  ;;  %p746_p0 = scmp.lt.u32.totalorder %s993_s27, %s1040_s3 }
 0x1b8   : > { %p747_p1 = scmp.lt.u32.totalorder %s745_s18, %s741_s30  ;;  %p749_p4 = scmp.lt.u32.totalorder %s741_s30, %s993_s27 }
 0x1b9   : > { %p743_p2 = pnand %p742_p9, %p922_p12 }
 0x1ba   : > { %p748_p11 = por %p747_p1, %p746_p0 }
 0x1bb   : > { %p744_p5 = pneg %p743_p2 }
 0x1bc   : > { %p750_p6 = por %p749_p4, %p748_p11 }
 0x1be   : > { %p751_p8 = pnand %p750_p6, %p744_p5 }
 0x1c0   : > { %754 = shalt.err (!%p751_p8)
}
 0x1c1   : > { %605 = dma.vmem_to_hbm [thread:$0]  (%p922_p12), %s995_s9, 128, %s993_s27, %s466_s28  }
 0x1c2 PF: > { %s491_s25 = sand.u32 1, %s785_s12   ;;  %p1055_p10 = scmp.ne.s32.totalorder %s1045_s19, 0 }
 0x1c3   : > { %p1056_p13 = scmp.ge.s32.totalorder %s797_s15, 2  ;;  %s492_s26 = scalar_lea.sflag [#allocation4], %s491_s25 }
 0x1c5   : > { %p616_p3 = pnand %p1056_p13, %p1055_p10 }
 0x1c7   : > { %780 = dma.done.wait (!%p616_p3), %s492_s26, 128  }
 0x1c8   : > { %782 = vsyncadd (!%p616_p3), %s492_s26, 4294967168  ;;  %p17_p7 = scmp.ge.s32.totalorder %s887_s24, 4   ;;  %s1057_s12 = smov %s789_s13 }
 0x1c9   : > { %s1058_s13 = smov %s793_s14  ;;  %s1059_s14 = smov %s918_s17 }
 0x1ca   : > { %s1060_s15 = smov %s887_s24  ;;  %19 = sbr.rel (!%p17_p7) target bundleno = 6 (0x6), region = 83 }
 0x1d1   :  { %497 = vsyncpa [#allocation3], 1 }
 0x1d2   :  { %499 = vsyncpa [#allocation3 + $0x1], 1 }
 0x1d3   :  { %500 = vsyncpa [#allocation6], 1 }
 0x1d4   :  { %501 = vsyncpa [#allocation4], 1 }
 0x1d5   :  { %503 = vsyncpa [#allocation4 + $0x1], 1 }

</bundles_post_ra>
